<compile_context>
chip_gen: v5e
topology: v5e:2x2
jax: 0.10.0
libtpu: 0.0.40
codegen_flags: <defaults>
</compile_context>

<pallas_src>
import jax
import jax.numpy as jnp
from jax.experimental import pallas as pl
from jax.experimental.pallas import tpu as pltpu


K_IN = 784          # real input features (28*28), streamed unpadded
H_REAL = 100        # real hidden features
H_PAD = 128         # hidden padded to one lane tile
C_REAL = 10         # real classes
C_PAD = 128         # classes padded to one lane tile (lane-dense output)


def mlp_kernel(x_ref, w1_ref, b1_ref, w2_ref, b2_ref, o_ref):
    # --- fully_connected1: Linear(784 -> 100) + ReLU (hidden padded to 128) ---
    # x arrives as f32 straight from HBM; cast to bf16 here (hidden under DMA)
    # so the first matmul hits the bf16 MXU path with f32 accumulation.
    x = x_ref[...].astype(jnp.bfloat16)                    # (TB, 784)
    h = jnp.dot(x, w1_ref[...], preferred_element_type=jnp.float32)
    h = jnp.maximum(h + b1_ref[...], 0.0)                  # bias + ReLU, f32 VPU

    # --- fully_connected2: Linear(100 -> 10) + Softmax(dim=1) ---
    logits = jnp.dot(h.astype(jnp.bfloat16), w2_ref[...],
                     preferred_element_type=jnp.float32)
    # b2 already carries -1e30 in the padded class columns, so no iota/where:
    # exp(-1e30 - m) underflows to exactly 0 for the 118 padding lanes.
    logits = logits + b2_ref[...]

    # Numerically-stable softmax along features; reciprocal goes to the EUP.
    m = jnp.max(logits, axis=1, keepdims=True)
    e = jnp.exp(logits - m)
    denom = jnp.sum(e, axis=1, keepdims=True)
    o_ref[...] = e * pl.reciprocal(denom, approx=True)


def _round_up(x, m):
    return ((x + m - 1) // m) * m


def _pick_tile_and_vmem(B):
    """Batch tile (multiple of 8) sized per TPU generation's VMEM budget."""
    try:
        kind = jax.devices()[0].device_kind.lower()
    except Exception:  # pragma: no cover - fallback if device query fails
        kind = ""
    if "v5" in kind:
        cap = 1024                       # stay friendly to v5e's smaller budget
    else:
        cap = 2048                       # v6e / v7x
    tb = min(cap, _round_up(max(B, 8), 8))
    if "v7" in kind and B > 16:
        # Guarantee >= 2 grid steps so both v7x TensorCores get work.
        tb = min(tb, _round_up(-(-B // 2), 8))
    # 48 MiB scoped VMEM: < 64 MiB physical on v7x, ample on v5e/v6e (128 MiB).
    return tb, 48 * 1024 * 1024


def network_forward(x_nchw, w1, b1, w2, b2, tb=None):
    """x_nchw: (B, 1, 28, 28) float32 -> (B, 10) float32 softmax probs.

    w1: (784, 100), b1: (100,) or (1, 100), w2: (100, 10), b2: (10,) or (1, 10)
    (weights stored as (in, out), equivalent to torch's x @ W.T + b).
    """
    B = x_nchw.shape[0]
    x = x_nchw.reshape(B, -1).astype(jnp.float32)    # (B, 784) == x.view(B, -1)

    tb_auto, vmem_limit = _pick_tile_and_vmem(B)
    TB = tb if tb is not None else tb_auto

    # Pad only the (tiny, reused) weights/biases; x is streamed unpadded.
    #   - extra w1 columns / b1 entries are zero -> padded h columns are 0
    #   - extra w2 rows are zero -> padded h columns contribute nothing
    #   - padded b2 columns are -1e30 -> padded softmax columns are exact 0
    w1p = jnp.zeros((K_IN, H_PAD), jnp.bfloat16).at[:, :H_REAL].set(
        w1.astype(jnp.bfloat16))
    b1p = jnp.zeros((1, H_PAD), jnp.float32).at[:, :H_REAL].set(
        b1.reshape(1, H_REAL).astype(jnp.float32))
    w2p = jnp.zeros((H_PAD, C_PAD), jnp.bfloat16).at[:H_REAL, :C_REAL].set(
        w2.astype(jnp.bfloat16))
    b2p = jnp.full((1, C_PAD), -1e30, jnp.float32).at[:, :C_REAL].set(
        b2.reshape(1, C_REAL).astype(jnp.float32))

    grid = (pl.cdiv(B, TB),)             # partial last tile is fine (rows indep.)

    flops = 2 * B * (K_IN * H_PAD + H_PAD * C_PAD)
    bytes_accessed = (x.size * 4 + w1p.size * 2 + w2p.size * 2
                      + b1p.size * 4 + b2p.size * 4 + B * C_PAD * 4)

    out = pl.pallas_call(
        mlp_kernel,
        out_shape=jax.ShapeDtypeStruct((B, C_PAD), jnp.float32),
        grid=grid,
        in_specs=[
            # streamed per-tile (double-buffered by the Pallas pipeline);
            # last dim 784 == full array extent, so no (·,128) padding needed.
            pl.BlockSpec((TB, K_IN), lambda i: (i, 0)),
            # weights/biases: constant index_map -> fetched once, VMEM-resident
            pl.BlockSpec((K_IN, H_PAD), lambda i: (0, 0)),
            pl.BlockSpec((1, H_PAD), lambda i: (0, 0)),
            pl.BlockSpec((H_PAD, C_PAD), lambda i: (0, 0)),
            pl.BlockSpec((1, C_PAD), lambda i: (0, 0)),
        ],
        out_specs=pl.BlockSpec((TB, C_PAD), lambda i: (i, 0)),
        compiler_params=pltpu.CompilerParams(
            dimension_semantics=("parallel",),
            vmem_limit_bytes=vmem_limit),
        cost_estimate=pl.CostEstimate(
            flops=flops,
            transcendentals=B * C_PAD,
            bytes_accessed=bytes_accessed),
    )(x, w1p, b1p, w2p, b2p)

    # Drop the lane-padded class columns (exact zeros for real rows).
    return out[:B, :C_REAL]


def init_params(key):
    """Deterministic PyTorch-style init: U(-1/sqrt(fan_in), 1/sqrt(fan_in))."""
    k1, k2, k3, k4 = jax.random.split(key, 4)
    bound1 = 1.0 / jnp.sqrt(784.0)
    bound2 = 1.0 / jnp.sqrt(100.0)
    # stored as (in, out) so the kernel does x @ W
    w1 = jax.random.uniform(k1, (784, 100), jnp.float32, -bound1, bound1)
    b1 = jax.random.uniform(k2, (1, 100), jnp.float32, -bound1, bound1)
    w2 = jax.random.uniform(k3, (100, 10), jnp.float32, -bound2, bound2)
    b2 = jax.random.uniform(k4, (1, 10), jnp.float32, -bound2, bound2)
    return w1, b1, w2, b2


def reference_forward(x_nchw, w1, b1, w2, b2):
    """Pure-JAX f32 reference of the PyTorch module."""
    B = x_nchw.shape[0]
    x = x_nchw.reshape(B, -1)
    h = jnp.maximum(x @ w1 + b1, 0.0)
    logits = h @ w2 + b2
    return jax.nn.softmax(logits, axis=1)


if __name__ == "__main__":
    key = jax.random.PRNGKey(0)
    k_x, k_p = jax.random.split(key)

    B = 8
    # MNIST-shaped input, NCHW
    x = jax.random.normal(k_x, (B, 1, 28, 28), dtype=jnp.float32)
    w1, b1, w2, b2 = init_params(k_p)

    out = network_forward(x, w1, b1, w2, b2)
    out = jax.block_until_ready(out)

    # Sanity: output is (B, 10), rows sum to ~1 (approx reciprocal), and it
    # matches the f32 reference within bf16 tolerance.
    assert out.shape == (B, 10)
    row_sums = jnp.sum(out, axis=1)
    assert jnp.allclose(row_sums, jnp.ones((B,)), atol=5e-3), row_sums

    ref = reference_forward(x, w1, b1, w2, b2)
    assert jnp.allclose(out, ref, atol=3e-2), jnp.max(jnp.abs(out - ref))

    print("KERNEL_OK")
</pallas_src>

<mosaic_0001>
module attributes {stable_mosaic.version = 11 : i64} {
  func.func @mlp_kernel(%arg0: i32, %arg1: memref<8x784xf32, #tpu.memory_space<vmem>>, %arg2: memref<784x128xbf16, #tpu.memory_space<vmem>>, %arg3: memref<1x128xf32, #tpu.memory_space<vmem>>, %arg4: memref<128x128xbf16, #tpu.memory_space<vmem>>, %arg5: memref<1x128xf32, #tpu.memory_space<vmem>>, %arg6: memref<8x128xf32, #tpu.memory_space<vmem>>) attributes {dimension_semantics = [#tpu.dimension_semantics<parallel>], iteration_bounds = array<i64: 1>, scalar_prefetch = 0 : i64, scratch_operands = 0 : i64, tpu.core_type = #tpu.core_type<tc>, window_params = [{transform_indices = @transform_0, window_bounds = array<i64: 8, 784>}, {pipeline_mode = #tpu.pipeline_mode<synchronous>, transform_indices = @transform_1, window_bounds = array<i64: 784, 128>}, {pipeline_mode = #tpu.pipeline_mode<synchronous>, transform_indices = @transform_2, window_bounds = array<i64: 1, 128>}, {pipeline_mode = #tpu.pipeline_mode<synchronous>, transform_indices = @transform_3, window_bounds = array<i64: 128, 128>}, {pipeline_mode = #tpu.pipeline_mode<synchronous>, transform_indices = @transform_4, window_bounds = array<i64: 1, 128>}, {transform_indices = @transform_5, window_bounds = array<i64: 8, 128>}]} {
    %c0 = arith.constant 0 : index
    %c0_0 = arith.constant 0 : index
    %0 = vector.load %arg1[%c0, %c0_0] : memref<8x784xf32, #tpu.memory_space<vmem>>, vector<8x784xf32>
    %1 = arith.truncf %0 : vector<8x784xf32> to vector<8x784xbf16>
    %c0_1 = arith.constant 0 : index
    %c0_2 = arith.constant 0 : index
    %2 = vector.load %arg2[%c0_1, %c0_2] : memref<784x128xbf16, #tpu.memory_space<vmem>>, vector<784x128xbf16>
    %cst = arith.constant dense<0.000000e+00> : vector<8x128xf32>
    %3 = tpu.matmul %1, %2, %cst {dimension_numbers = #tpu.dot_dimension_numbers<[1], [0], [0], [1], [0, 0, 1, 1], [], []>} : vector<8x784xbf16>, vector<784x128xbf16>, vector<8x128xf32> -> vector<8x128xf32>
    %c0_3 = arith.constant 0 : index
    %c0_4 = arith.constant 0 : index
    %4 = vector.load %arg3[%c0_3, %c0_4] : memref<1x128xf32, #tpu.memory_space<vmem>>, vector<1x128xf32>
    %5 = vector.broadcast %4 : vector<1x128xf32> to vector<8x128xf32>
    %6 = arith.addf %3, %5 : vector<8x128xf32>
    %cst_5 = arith.constant 0.000000e+00 : f32
    %7 = vector.broadcast %cst_5 : f32 to vector<8x128xf32>
    %8 = arith.maximumf %6, %7 : vector<8x128xf32>
    %9 = arith.truncf %8 : vector<8x128xf32> to vector<8x128xbf16>
    %c0_6 = arith.constant 0 : index
    %c0_7 = arith.constant 0 : index
    %10 = vector.load %arg4[%c0_6, %c0_7] : memref<128x128xbf16, #tpu.memory_space<vmem>>, vector<128x128xbf16>
    %cst_8 = arith.constant dense<0.000000e+00> : vector<8x128xf32>
    %11 = tpu.matmul %9, %10, %cst_8 {dimension_numbers = #tpu.dot_dimension_numbers<[1], [0], [0], [1], [0, 0, 1, 1], [], []>} : vector<8x128xbf16>, vector<128x128xbf16>, vector<8x128xf32> -> vector<8x128xf32>
    %c0_9 = arith.constant 0 : index
    %c0_10 = arith.constant 0 : index
    %12 = vector.load %arg5[%c0_9, %c0_10] : memref<1x128xf32, #tpu.memory_space<vmem>>, vector<1x128xf32>
    %13 = vector.broadcast %12 : vector<1x128xf32> to vector<8x128xf32>
    %14 = arith.addf %11, %13 : vector<8x128xf32>
    %cst_11 = arith.constant dense<0xFF800000> : vector<8xf32>
    %15 = vector.multi_reduction <maximumf>, %14, %cst_11 [1] : vector<8x128xf32> to vector<8xf32>
    %16 = vector.shape_cast %15 : vector<8xf32> to vector<8x1xf32>
    %17 = vector.broadcast %16 : vector<8x1xf32> to vector<8x128xf32>
    %18 = arith.subf %14, %17 : vector<8x128xf32>
    %19 = math.exp %18 : vector<8x128xf32>
    %cst_12 = arith.constant dense<0.000000e+00> : vector<8xf32>
    %20 = vector.multi_reduction <add>, %19, %cst_12 [1] : vector<8x128xf32> to vector<8xf32>
    %21 = vector.shape_cast %20 : vector<8xf32> to vector<8x1xf32>
    %22 = tpu.reciprocal %21 {approx = true} : vector<8x1xf32> -> vector<8x1xf32>
    %23 = vector.broadcast %22 : vector<8x1xf32> to vector<8x128xf32>
    %24 = arith.mulf %19, %23 : vector<8x128xf32>
    %c0_13 = arith.constant 0 : index
    %c0_14 = arith.constant 0 : index
    %25 = vector.load %arg6[%c0_13, %c0_14] : memref<8x128xf32, #tpu.memory_space<vmem>>, vector<8x128xf32>
    tpu.vector_store %arg6[%c0_13, %c0_14], %24 {strides = array<i32>} : memref<8x128xf32, #tpu.memory_space<vmem>>, vector<8x128xf32>,
    return
  }
  func.func @transform_0(%arg0: i32) -> (i32, i32) {
    %c0_i32 = arith.constant 0 : i32
    %c0_i32_0 = arith.constant 0 : i32
    return %arg0, %c0_i32 : i32, i32
  }
  func.func @transform_1(%arg0: i32) -> (i32, i32) {
    %c0_i32 = arith.constant 0 : i32
    %c0_i32_0 = arith.constant 0 : i32
    %c0_i32_1 = arith.constant 0 : i32
    return %c0_i32, %c0_i32_0 : i32, i32
  }
  func.func @transform_2(%arg0: i32) -> (i32, i32) {
    %c0_i32 = arith.constant 0 : i32
    %c0_i32_0 = arith.constant 0 : i32
    %c0_i32_1 = arith.constant 0 : i32
    return %c0_i32, %c0_i32_0 : i32, i32
  }
  func.func @transform_3(%arg0: i32) -> (i32, i32) {
    %c0_i32 = arith.constant 0 : i32
    %c0_i32_0 = arith.constant 0 : i32
    %c0_i32_1 = arith.constant 0 : i32
    return %c0_i32, %c0_i32_0 : i32, i32
  }
  func.func @transform_4(%arg0: i32) -> (i32, i32) {
    %c0_i32 = arith.constant 0 : i32
    %c0_i32_0 = arith.constant 0 : i32
    %c0_i32_1 = arith.constant 0 : i32
    return %c0_i32, %c0_i32_0 : i32, i32
  }
  func.func @transform_5(%arg0: i32) -> (i32, i32) {
    %c0_i32 = arith.constant 0 : i32
    %c0_i32_0 = arith.constant 0 : i32
    return %arg0, %c0_i32 : i32, i32
  }
}

</mosaic_0001>

<bundles_post_ra>
// kernel: tpu_custom_call.1
= control target key start
LH: loop header
LB: loop body
LE: loop exit
PB: predicated region body
PF: predicated region fallthrough
CT: control target
= control target key end

     0   :  { %10 = vsyncpa [#allocation3], 0  ;;  %s1137_s0 = inlined_call_operand.hbm [shape: f32[8,784], index: 0, kind: input, shape index: {}]   ;;  %s1138_s1 = inlined_call_operand.hbm [shape: bf16[784,128], index: 1, kind: input, shape index: {}]   ;;  %s1139_s2 = inlined_call_operand.vmem [shape: f32[1,128], index: 2, kind: input, shape index: {}]   ;;  %s1140_s3 = inlined_call_operand.hbm [shape: bf16[128,128], index: 3, kind: input, shape index: {}]   ;;  %s1141_s4 = inlined_call_operand.vmem [shape: f32[1,128], index: 4, kind: input, shape index: {}]   ;;  %s1142_s5 = inlined_call_operand.hbm [shape: f32[8,128], index: 5, kind: output, shape index: {}]  }
   0x1   :  { %11 = vsyncpa [#allocation6], 0  ;;  %s28_s20 = sshll.u32 %s1138_s1, 4  ;;  %s29_s20 = int_to_ptr.hbm [resolvable:$true] %s28_s20 }
   0x2   :  { %12 = vsyncpa [#allocation4], 0  ;;  %s1083_s21 = smov [#allocation5]   ;;  %s18_s25 = sshll.u32 %s1137_s0, 4  ;;  %s19_s25 = int_to_ptr.hbm [resolvable:$true] %s18_s25 }
   0x3   :  { %s30_s22 = sshll.u32 %s1083_s21, 4  ;;  %s1084_s26 = smov 64   ;;  %s31_s22 = int_to_ptr.vmem [resolvable:$true] %s30_s22 }
   0x4   :  { %s1085_s27 = smov 4   ;;  %s1086_s28 = smov [#allocation2]  }
   0x5   :  { %36 = dma.hbm_to_vmem [thread:$0]  %s29_s20, 6272, %s31_s22, [#allocation6], %s1084_s26, %s1084_s26, %s1085_s27  }
   0x6   :  { %s20_s29 = sshll.u32 %s1086_s28, 4  ;;  %s43_s7 = sshll.u32 %s1140_s3, 4  ;;  %s21_s29 = int_to_ptr.vmem [resolvable:$true] %s20_s29  ;;  %s44_s7 = int_to_ptr.hbm [resolvable:$true] %s43_s7 }
   0x7   :  { %23 = dma.hbm_to_vmem [thread:$0]  %s19_s25, 896, %s21_s29, [#allocation3]  }
   0x8   :  { %s1087_s1 = smov [#allocation7]  }
   0x9   :  { %s45_s8 = sshll.u32 %s1087_s1, 4  ;;  %s46_s8 = int_to_ptr.vmem [resolvable:$true] %s45_s8 }
   0xa   :  { %51 = dma.hbm_to_vmem [thread:$0]  %s44_s7, 1024, %s46_s8, [#allocation6], %s1084_s26, %s1084_s26, %s1085_s27  }
   0xb   :  { %1077 = dma.done.wait [#allocation3], 896  }
   0xc   :  { %1078 = vsyncadd [#allocation3], 4294966400 }
   0xd   :  { %1079 = dma.done.wait [#allocation6], 7296  }
   0xe   :  { %1080 = vsyncadd [#allocation6], 4294960000  ;;  %v919_v0 = vld [vmem:[#allocation5 + $0x38] sm:$0xff]  ;;  %v918_v3 = vld [vmem:[#allocation5 + $0x30] sm:$0xff]  ;;  %vm477_vm0 = vcmask 130048   ;;  %s1088_s10 = smov [#allocation8]  }
   0xf   :  { %v927_v1 = vld [vmem:[#allocation5 + $0x78] sm:$0xff]  ;;  %481 = vmatpush.bf16.msra.mxu0 %v919_v0  ;;  %v926_v4 = vld [vmem:[#allocation5 + $0x70] sm:$0xff]  ;;  %v917_v8 = vld [vmem:[#allocation5 + $0x28] sm:$0xff]  ;;  %s670_s11 = sshll.u32 %s1088_s10, 4  ;;  %s672_s14 = sshll.u32 %s1142_s5, 4  ;;  %s671_s11 = int_to_ptr.vmem [resolvable:$true] %s670_s11  ;;  %s673_s14 = int_to_ptr.hbm [resolvable:$true] %s672_s14 }
  0x10   :  { %v935_v2 = vld [vmem:[#allocation5 + $0xb8] sm:$0xff]  ;;  %494 = vmatpush.bf16.msra.mxu1 %v927_v1  ;;  %v934_v5 = vld [vmem:[#allocation5 + $0xb0] sm:$0xff]  ;;  %v925_v9 = vld [vmem:[#allocation5 + $0x68] sm:$0xff] }
  0x11   :  { %507 = vmatpush.bf16.msra.mxu2 %v935_v2  ;;  %v943_v6 = vld [vmem:[#allocation5 + $0xf8] sm:$0xff]  ;;  %v942_v7 = vld [vmem:[#allocation5 + $0xf0] sm:$0xff]  ;;  %v933_v10 = vld [vmem:[#allocation5 + $0xa8] sm:$0xff] }
  0x12   :  { %520 = vmatpush.bf16.msra.mxu3 %v943_v6  ;;  %v941_v11 = vld [vmem:[#allocation5 + $0xe8] sm:$0xff]  ;;  %v916_v12 = vld [vmem:[#allocation5 + $0x20] sm:$0xff]  ;;  %v915_v16 = vld [vmem:[#allocation5 + $0x18] sm:$0xff] }
  0x13   :  { %482 = vmatpush.bf16.msra.mxu0 %v918_v3  ;;  %v924_v13 = vld [vmem:[#allocation5 + $0x60] sm:$0xff]  ;;  %v923_v17 = vld [vmem:[#allocation5 + $0x58] sm:$0xff]  ;;  %v914_v20 = vld [vmem:[#allocation5 + $0x10] sm:$0xff] }
  0x14   :  { %495 = vmatpush.bf16.msra.mxu1 %v926_v4  ;;  %v932_v14 = vld [vmem:[#allocation5 + $0xa0] sm:$0xff]  ;;  %v931_v18 = vld [vmem:[#allocation5 + $0x98] sm:$0xff]  ;;  %v922_v21 = vld [vmem:[#allocation5 + $0x50] sm:$0xff] }
  0x15   :  { %508 = vmatpush.bf16.msra.mxu2 %v934_v5  ;;  %v940_v15 = vld [vmem:[#allocation5 + $0xe0] sm:$0xff]  ;;  %v939_v19 = vld [vmem:[#allocation5 + $0xd8] sm:$0xff]  ;;  %v930_v22 = vld [vmem:[#allocation5 + $0x90] sm:$0xff] }
  0x16   :  { %521 = vmatpush.bf16.msra.mxu3 %v942_v7  ;;  %v938_v23 = vld [vmem:[#allocation5 + $0xd0] sm:$0xff]  ;;  %v913_v24 = vld [vmem:[#allocation5 + $0x8] sm:$0xff]  ;;  %v912_v27 = vld [vmem:[#allocation5] sm:$0xff] }
  0x17   :  { %483 = vmatpush.bf16.msra.mxu0 %v917_v8  ;;  %v921_v25 = vld [vmem:[#allocation5 + $0x48] sm:$0xff]  ;;  %v920_v29 = vld [vmem:[#allocation5 + $0x40] sm:$0xff]  ;;  %v68_v31 = vld [vmem:[#allocation2 + $0x8] sm:$0xff] }
  0x18   :  { %496 = vmatpush.bf16.msra.mxu1 %v925_v9  ;;  %v929_v26 = vld [vmem:[#allocation5 + $0x88] sm:$0xff]  ;;  %v951_v32 = vld [vmem:[#allocation5 + $0x138] sm:$0xff]  ;;  %v928_v34 = vld [vmem:[#allocation5 + $0x80] sm:$0xff]  ;;  %v75_v37 = vpack.c.bf16 %v68_v31, %v68_v31 }
  0x19   :  { %509 = vmatpush.bf16.msra.mxu2 %v933_v10  ;;  %v937_v28 = vld [vmem:[#allocation5 + $0xc8] sm:$0xff]  ;;  %v959_v33 = vld [vmem:[#allocation5 + $0x178] sm:$0xff]  ;;  %v936_v38 = vld [vmem:[#allocation5 + $0xc0] sm:$0xff] }
  0x1a   :  { %522 = vmatpush.bf16.msra.mxu3 %v941_v11  ;;  %v67_v30 = vld [vmem:[#allocation2] sm:$0xff]  ;;  %v69_v35 = vld [vmem:[#allocation2 + $0x10] sm:$0xff]  ;;  %v960_v39 = vld [vmem:[#allocation5 + $0x180] sm:$0xff] }
  0x1b   :  { %484 = vmatpush.bf16.msra.mxu0 %v916_v12  ;;  %v74_v36 = vpack.c.bf16 %v67_v30, %v67_v30  ;;  %v70_v40 = vld [vmem:[#allocation2 + $0x18] sm:$0xff]  ;;  %v950_v41 = vld [vmem:[#allocation5 + $0x130] sm:$0xff]  ;;  %v76_v43 = vpack.c.bf16 %v69_v35, %v69_v35  ;;  %v949_v45 = vld [vmem:[#allocation5 + $0x128] sm:$0xff] }
  0x1c   :  { %497 = vmatpush.bf16.msra.mxu1 %v924_v13  ;;  %v958_v42 = vld [vmem:[#allocation5 + $0x170] sm:$0xff]  ;;  %v77_v44 = vpack.c.bf16 %v70_v40, %v70_v40  ;;  %v957_v46 = vld [vmem:[#allocation5 + $0x168] sm:$0xff]  ;;  %v948_v47 = vld [vmem:[#allocation5 + $0x120] sm:$0xff] }
  0x1d   :  { %510 = vmatpush.bf16.msra.mxu2 %v932_v14  ;;  %v956_v48 = vld [vmem:[#allocation5 + $0x160] sm:$0xff]  ;;  %v947_v49 = vld [vmem:[#allocation5 + $0x118] sm:$0xff]  ;;  %v946_v52 = vld [vmem:[#allocation5 + $0x110] sm:$0xff] }
  0x1e   :  { %523 = vmatpush.bf16.msra.mxu3 %v940_v15  ;;  %v955_v50 = vld [vmem:[#allocation5 + $0x158] sm:$0xff]  ;;  %v954_v53 = vld [vmem:[#allocation5 + $0x150] sm:$0xff]  ;;  %v945_v55 = vld [vmem:[#allocation5 + $0x108] sm:$0xff] }
  0x1f   :  { %485 = vmatpush.bf16.msra.mxu0 %v915_v16  ;;  %v73_v51 = vld [vmem:[#allocation2 + $0x30] sm:$0xff]  ;;  %v953_v56 = vld [vmem:[#allocation5 + $0x148] sm:$0xff]  ;;  %v944_v57 = vld [vmem:[#allocation5 + $0x100] sm:$0xff] }
  0x20   :  { %498 = vmatpush.bf16.msra.mxu1 %v923_v17  ;;  %v80_v54 = vpack.c.bf16 %v73_v51, %v73_v51  ;;  %v952_v58 = vld [vmem:[#allocation5 + $0x140] sm:$0xff]  ;;  %v71_v59 = vld [vmem:[#allocation2 + $0x20] sm:$0xff]  ;;  %v72_v60 = vld [vmem:[#allocation2 + $0x28] sm:$0xff] }
  0x21   :  { %511 = vmatpush.bf16.msra.mxu2 %v931_v18  ;;  %v78_v61 = vpack.c.bf16 %v71_v59, %v71_v59  ;;  %v79_v62 = vpack.c.bf16 %v72_v60, %v72_v60  ;;  %v968_v63 = vld [vmem:[#allocation7 + $0x38] sm:$0xff]  ;;  %v967_v0 = vld [vmem:[#allocation7 + $0x30] sm:$0xff]  ;;  %v966_v1 = vld [vmem:[#allocation7 + $0x28] sm:$0xff] }
  0x22   :  { %524 = vmatpush.bf16.msra.mxu3 %v939_v19  ;;  %v965_v2 = vld [vmem:[#allocation7 + $0x20] sm:$0xff]  ;;  %v964_v3 = vld [vmem:[#allocation7 + $0x18] sm:$0xff]  ;;  %v963_v4 = vld [vmem:[#allocation7 + $0x10] sm:$0xff] }
  0x23   :  { %486 = vmatpush.bf16.msra.mxu0 %v914_v20  ;;  %v962_v5 = vld [vmem:[#allocation7 + $0x8] sm:$0xff]  ;;  %v961_v8 = vld [vmem:[#allocation7] sm:$0xff] }
  0x24   :  { %499 = vmatpush.bf16.msra.mxu1 %v922_v21  ;;  %v975_v13 = vld [vmem:[%s1139_s2] ss:$0 sm:$0xff] }
  0x25   :  { %512 = vmatpush.bf16.msra.mxu2 %v930_v22  ;;  %v976_v31 = vld [vmem:[%s1141_s4] ss:$0 sm:$0xff] }
  0x26   :  { %525 = vmatpush.bf16.msra.mxu3 %v938_v23 }
  0x27   :  { %487 = vmatpush.bf16.msra.mxu0 %v913_v24 }
  0x28   :  { %500 = vmatpush.bf16.msra.mxu1 %v921_v25 }
  0x29   :  { %513 = vmatpush.bf16.msra.mxu2 %v929_v26 }
  0x2a   :  { %526 = vmatpush.bf16.msra.mxu3 %v937_v28 }
  0x2b   :  { %488 = vmatpush.bf16.msra.mxu0 %v912_v27 }
  0x2c   :  { %501 = vmatpush.bf16.msra.mxu1 %v920_v29 }
  0x2d   :  { %514 = vmatpush.bf16.msra.mxu2 %v928_v34 }
  0x2e   :  { %489 = vmatmul.bf16.vlgmr.msra.gmra.mxu0 %v74_v36  ;;  %527 = vmatpush.bf16.msra.mxu3 %v936_v38 }
  0x2f   :  { %533 = vmatpush.bf16.msrb.mxu0 %v951_v32  ;;  %502 = vmatmul.bf16.vlgmr.msra.gmra.mxu1 %v75_v37 }
  0x30   :  { %546 = vmatpush.bf16.msrb.mxu1 %v959_v33  ;;  %515 = vmatmul.bf16.vlgmr.msra.gmra.mxu2 %v76_v43 }
  0x31   :  { %566 = vmatpush.bf16.msrb.mxu2 %v960_v39  ;;  %528 = vmatmul.bf16.vlgmr.msra.gmra.mxu3 %v77_v44 }
  0x32   :  { %642 = vmatpush.bf16.msrb.mxu3 %v968_v63 }
  0x33   :  { %534 = vmatpush.bf16.msrb.mxu0 %v950_v41 }
  0x34   :  { %547 = vmatpush.bf16.msrb.mxu1 %v958_v42 }
  0x36   :  { %643 = vmatpush.bf16.msrb.mxu3 %v967_v0 }
  0x37   :  { %535 = vmatpush.bf16.msrb.mxu0 %v949_v45 }
  0x38   :  { %548 = vmatpush.bf16.msrb.mxu1 %v957_v46 }
  0x3a   :  { %644 = vmatpush.bf16.msrb.mxu3 %v966_v1 }
  0x3b   :  { %536 = vmatpush.bf16.msrb.mxu0 %v948_v47 }
  0x3c   :  { %549 = vmatpush.bf16.msrb.mxu1 %v956_v48 }
  0x3e   :  { %645 = vmatpush.bf16.msrb.mxu3 %v965_v2 }
  0x3f   :  { %537 = vmatpush.bf16.msrb.mxu0 %v947_v49 }
  0x40   :  { %550 = vmatpush.bf16.msrb.mxu1 %v955_v50  ;;  %879 = vmatmul.msk.bf16.vlgmr.msrb.gmra.mxu2 %vm477_vm0, %v80_v54 }
  0x42   :  { %646 = vmatpush.bf16.msrb.mxu3 %v964_v3 }
  0x43   :  { %538 = vmatpush.bf16.msrb.mxu0 %v946_v52 }
  0x44   :  { %551 = vmatpush.bf16.msrb.mxu1 %v954_v53 }
  0x46   :  { %647 = vmatpush.bf16.msrb.mxu3 %v963_v4 }
  0x47   :  { %539 = vmatpush.bf16.msrb.mxu0 %v945_v55 }
  0x48   :  { %552 = vmatpush.bf16.msrb.mxu1 %v953_v56 }
  0x4a   :  { %648 = vmatpush.bf16.msrb.mxu3 %v962_v5 }
  0x4b   :  { %540 = vmatpush.bf16.msrb.mxu0 %v944_v57 }
  0x4c   :  { %553 = vmatpush.bf16.msrb.mxu1 %v952_v58 }
  0x4e   :  { %541 = vmatmul.bf16.vlgmr.msrb.gmra.mxu0 %v78_v61  ;;  %649 = vmatpush.bf16.msrb.mxu3 %v961_v8 }
  0x4f   :  { %554 = vmatmul.bf16.vlgmr.msrb.gmra.mxu1 %v79_v62 }
  0xab   :  { %v490_v6 = vpop.f32.mrf.mxu0 }
  0xac   :  { %v503_v7 = vpop.f32.mrf.mxu1  ;;  %v491_v14 = vadd.f32 %v975_v13, %v490_v6 }
  0xae   :  { %v504_v17 = vadd.f32 %v503_v7, %v491_v14 }
  0xb3   :  { %v492_v9 = vpop.f32.mrf.mxu0  ;;  %v516_v11 = vpop.f32.mrf.mxu2 }
  0xb4   :  { %v505_v10 = vpop.f32.mrf.mxu1  ;;  %v529_v12 = vpop.f32.mrf.mxu3  ;;  %v517_v18 = vadd.f32 %v516_v11, %v504_v17 }
  0xb6   :  { %v530_v20 = vadd.f32 %v529_v12, %v517_v18 }
  0xbb   :  { %v518_v15 = vpop.f32.mrf.mxu2 }
  0xbc   :  { %v531_v16 = vpop.f32.mrf.mxu3 }
  0xc3   :  { %v568_v19 = vpop.f32.mrf.mxu2 }
  0xcb   :  { %v542_v21 = vpop.f32.mrf.mxu0  ;;  %v570_v25 = vpop.f32.mrf.mxu2 }
  0xcc   :  { %v555_v22 = vpop.f32.mrf.mxu1  ;;  %v543_v23 = vadd.f32 %v542_v21, %v530_v20 }
  0xce   :  { %v556_v24 = vadd.f32 %v555_v22, %v543_v23 }
  0xd0   :  { %v569_v26 = vadd.f32 %v568_v19, %v556_v24 }
  0xd2   :  { %v572_v27 = vmax.f32 %v569_v26, 0.0 }
  0xd3   :  { %v544_v28 = vpop.f32.mrf.mxu0 }
  0xd4   :  { %v557_v29 = vpop.f32.mrf.mxu1  ;;  %v573_v30 = vpack.c.bf16 %v572_v27, %v572_v27 }
  0xd6   :  { %650 = vmatmul.bf16.vlgmr.msrb.gmra.mxu3 %v573_v30 }
 0x159   :  { %v651_v32 = vpop.f32.mrf.mxu3 }
 0x15a   :  { %v652_v33 = vadd.f32 %v976_v31, %v651_v32 }
 0x15c   :  { %655 = vmax.xlane.f32.xlu0 %v652_v33 }
 0x161   :  { %v653_v34 = vpop.f32.mrf.mxu3 }
 0x1cf   :  { %v656_v35 = vpop.xlane.xlu0 %655 }
 0x1d0   :  { %v657_v36 = vsub.f32 %v652_v33, %v656_v35 }
 0x1d2   :  { %v658_v37 = vmul.f32 1.442695, %v657_v36 }
 0x1d4   :  { %977 = vpow2.f32 %v658_v37 }
 0x1da   :  { %v978_v38 = vpop.eup %977 }
 0x1db   :  { %660 = vadd.xlane.f32.xlu0 %v978_v38 }
 0x24e   :  { %v661_v39 = vpop.xlane.xlu0 %660 }
 0x24f   :  { %979 = vrcp.f32 %v661_v39 }
 0x255   :  { %v980_v40 = vpop.eup %979 }
 0x256   :  { %v663_v41 = vmul.f32 %v980_v40, %v978_v38 }
 0x258   :  { %664 = vst [vmem:[#allocation8] sm:$0xff] %v663_v41 }
 0x259   :  { %675 = dma.vmem_to_hbm [thread:$0]  %s671_s11, 128, %s673_s14, [#allocation4]  }
 0x25a   :  { %1081 = dma.done.wait [#allocation4], 128  }
 0x25b   :  { %1082 = vsyncadd [#allocation4], 4294967168 }
 0x25c   :  { %680 = vsyncpa [#allocation3], 1 }
 0x25d   :  { %681 = vsyncpa [#allocation6], 1 }
 0x25e   :  { %682 = vsyncpa [#allocation4], 1 }

</bundles_post_ra>
